<compile_context>
chip_gen: v6e
topology: v6e:2x2x1
jax: 0.10.0
libtpu: 0.0.40
codegen_flags: <defaults>
</compile_context>

<pallas_src>
import jax
import jax.numpy as jnp
from jax.experimental import pallas as pl
from jax.experimental.pallas import tpu as pltpu

# ---- small, shape-consistent config (stand-in for RobertaConfig) -----------
HIDDEN = 32        # config.hidden_size (small stand-in for 768)
VOCAB = 256        # config.vocab_size  (small stand-in for 52000)
NUM_LAYERS = 12    # config.num_hidden_layers
LAYER_NUMS = (6, 12)
LN_EPS = 1e-5      # RobertaConfig.layer_norm_eps
BATCH = 2
SEQ = 16


# ------------------------------ Pallas kernel -------------------------------
def fused_head_kernel(h_ref, wd_ref, bd_ref, wdec_ref, bdec_ref, o_ref, x_sc):
    """Fused RobertaLMHead, vocab-major grid.

    Grid = (head, vocab_tile, token_tile).  On the first vocab tile the
    dense -> GELU -> LayerNorm result for the current token tile is computed
    and cached in the full-T VMEM scratch `x_sc` (indexed by the token block
    id); every vocab step then does one (tm, H) @ (H, tn) decoder matmul with
    the VMEM-resident decoder slab.  gamma/beta are pre-folded into wdec/bdec.
    """
    i = pl.program_id(2)               # token tile (innermost)

    @pl.when(pl.program_id(1) == 0)    # first vocab tile: build the epilogue
    def _():
        # dense: (tm, H)bf16 @ (H, H)bf16 -> f32 accumulation
        x = jnp.dot(h_ref[...], wd_ref[...], preferred_element_type=jnp.float32)
        x = x + bd_ref[...]
        # exact (erf) GELU in f32, matching torch.nn.functional.gelu default
        # (keep f32 on all generations; v5e has no bf16 VPU/EUP path).
        x = 0.5 * x * (1.0 + jax.lax.erf(x * 0.7071067811865476))
        # LayerNorm over last dim (biased variance, like torch.nn.LayerNorm);
        # the affine (gamma/beta) is folded into the decoder weight/bias.
        mean = jnp.mean(x, axis=-1, keepdims=True)
        var = jnp.mean((x - mean) * (x - mean), axis=-1, keepdims=True)
        x = (x - mean) * jax.lax.rsqrt(var + LN_EPS)
        x_sc[i] = x.astype(x_sc.dtype)

    # decoder tile: (tm, H)bf16 @ (H, tn)bf16 + (1, tn)f32 -> (tm, tn)
    out = jnp.dot(x_sc[i], wdec_ref[...], preferred_element_type=jnp.float32)
    o_ref[...] = (out + bdec_ref[...]).astype(o_ref.dtype)


# ------------------------- one-time parameter prep --------------------------
def prepare_head_params(params_list):
    """Fold the LayerNorm affine into the decoder and pre-stack / pre-cast all
    head weights.  Call ONCE at init; the result is reused by every forward
    (no per-call gamma-fold / stacking / bf16-cast HBM traffic).

      (x*gamma + beta) @ W + b  ==  x @ (gamma[:,None]*W) + (beta @ W + b)
    """
    w_dense = jnp.stack([p["w_dense"] for p in params_list], 0).astype(jnp.bfloat16)
    b_dense = jnp.stack([p["b_dense"] for p in params_list], 0)              # f32 (n,1,H)
    w_dec = jnp.stack([p["gamma"].reshape(-1, 1) * p["w_dec"]
                       for p in params_list], 0).astype(jnp.bfloat16)        # (n,H,V)
    b_dec = jnp.stack([p["beta"] @ p["w_dec"] + p["b_dec"]
                       for p in params_list], 0)                             # f32 (n,1,V)
    return {"w_dense": w_dense, "b_dense": b_dense, "w_dec": w_dec, "b_dec": b_dec}


def _vmem_limit_bytes():
    """Scoped VMEM limit: large, but never the full physical capacity."""
    phys = 128 * 1024 * 1024
    try:
        phys = int(getattr(pltpu.get_tpu_info(), "vmem_capacity_bytes", phys))
    except Exception:
        pass
    # Leave headroom for compiler-internal scratch; cap at ~96 MiB (v5e/v6e),
    # which becomes ~52 MiB on v7x's 64 MiB parts.
    return max(32 * 1024 * 1024, min(96 * 1024 * 1024, phys - 12 * 1024 * 1024))


# ------------------------------ kernel wrapper -------------------------------
def fused_mlm_heads(h_list, heads, *, tm=None, tn=None, out_dtype=jnp.float32):
    """Apply all MLM heads in a single pallas_call.

    h_list: list of per-head flattened hidden states, each [T, H] (f32).
    heads:  dict from prepare_head_params (pre-folded / pre-stacked weights).
    Returns logits of shape [n_heads, T, V] in `out_dtype`.
    """
    n_heads, H, V = heads["w_dec"].shape
    T, H2 = h_list[0].shape
    assert H == H2 and len(h_list) == n_heads

    # Tile sizes.  Weight reuse no longer depends on tm (the decoder slab is
    # resident across the token sweep), so tm/tn only set MXU shape and VMEM
    # footprint.  At real RoBERTa scale tm=1024, tn=2048 gives ~38 MiB
    # (incl. the full-T post-LN scratch) and fits v7x's 64 MiB VMEM; v5e/v6e
    # (128 MiB) may pass larger tiles.  Clamp at toy shapes.
    if tm is None:
        tm = min(T, 1024)
    if tn is None:
        tn = min(V, 2048)
    assert T % tm == 0 and V % tn == 0
    assert tm == T or tm % 16 == 0      # bf16 packs 2 rows per sublane
    assert tn == V or tn % 128 == 0     # lane-dense output tiles

    # Only the activations are prepared per call; weights were folded/stacked
    # once at init.
    h = jnp.stack(h_list, axis=0).astype(jnp.bfloat16)                 # (n, T, H)

    out_bytes = n_heads * T * V * jnp.dtype(out_dtype).itemsize
    cost = pl.CostEstimate(
        flops=2 * n_heads * T * H * (H + V),
        transcendentals=n_heads * T * H,
        bytes_accessed=int(h.size * 2 + heads["w_dense"].size * 2
                           + heads["w_dec"].size * 2 + heads["b_dense"].size * 4
                           + heads["b_dec"].size * 4 + out_bytes),
    )

    grid = (n_heads, V // tn, T // tm)   # vocab-major, token innermost
    return pl.pallas_call(
        fused_head_kernel,
        out_shape=jax.ShapeDtypeStruct((n_heads, T, V), out_dtype),
        grid_spec=pltpu.PrefetchScalarGridSpec(
            num_scalar_prefetch=0,
            grid=grid,
            in_specs=[
                # hidden: consumed only on the first vocab step; afterwards the
                # index map pins block 0 so the pipeline stops re-streaming it.
                pl.BlockSpec((None, tm, H),
                             lambda hd, j, i: (hd, jnp.where(j == 0, i, 0), 0)),
                pl.BlockSpec((None, H, H), lambda hd, j, i: (hd, 0, 0)),   # dense W
                pl.BlockSpec((None, 1, H), lambda hd, j, i: (hd, 0, 0)),   # dense b
                # decoder slab: block index depends only on (head, vocab) ->
                # held resident across the token sweep, read from HBM once/head.
                pl.BlockSpec((None, H, tn), lambda hd, j, i: (hd, 0, j)),
                pl.BlockSpec((None, 1, tn), lambda hd, j, i: (hd, 0, j)),
            ],
            out_specs=pl.BlockSpec((None, tm, tn), lambda hd, j, i: (hd, i, j)),
            # full-T post-LN activations in bf16 (T*H*2 B; ~12 MiB at real scale)
            scratch_shapes=[pltpu.VMEM((T // tm, tm, H), jnp.bfloat16)],
        ),
        compiler_params=pltpu.CompilerParams(
            dimension_semantics=("parallel", "arbitrary", "arbitrary"),
            vmem_limit_bytes=_vmem_limit_bytes(),
        ),
        cost_estimate=cost,
    )(h, heads["w_dense"], heads["b_dense"], heads["w_dec"], heads["b_dec"])


# ----------------------------- parameter init -------------------------------
def init_head_params(key, hidden, vocab):
    k1, k2, k3, k4, k5 = jax.random.split(key, 5)
    return {
        "w_dense": jax.random.normal(k1, (hidden, hidden), jnp.float32) * 0.02,
        "b_dense": jax.random.normal(k3, (1, hidden), jnp.float32) * 0.02,
        "gamma": 1.0 + 0.1 * jax.random.normal(k4, (1, hidden), jnp.float32),
        "beta": 0.05 * jax.random.normal(k5, (1, hidden), jnp.float32),
        "w_dec": jax.random.normal(k2, (hidden, vocab), jnp.float32) * 0.02,
        "b_dec": jax.random.normal(key, (1, vocab), jnp.float32) * 0.02,  # self.bias
    }


def base_model_stub(input_ids, embed_table, layer_weights):
    """Deterministic stand-in for the pretrained RoBERTa encoder.

    Returns the analogue of hidden_states[1]: a list of 13 arrays [B, S, H]
    (embedding output followed by 12 per-layer outputs)."""
    h = embed_table[input_ids]                         # (B, S, H)
    hidden_states = [h]
    for w in layer_weights:
        h = h + jnp.tanh(h @ w)                        # plain-JAX glue
        hidden_states.append(h)
    return hidden_states


# ------------------------- pure-JAX reference (f32) --------------------------
def mlm_head_ref(h, params):
    x = h @ params["w_dense"] + params["b_dense"]
    x = 0.5 * x * (1.0 + jax.lax.erf(x * 0.7071067811865476))
    mean = x.mean(-1, keepdims=True)
    var = ((x - mean) ** 2).mean(-1, keepdims=True)
    x = (x - mean) * jax.lax.rsqrt(var + LN_EPS)
    x = x * params["gamma"] + params["beta"]
    return x @ params["w_dec"] + params["b_dec"]


# ------------------------------- full forward -------------------------------
def more_grad_roberta_forward(input_ids, embed_table, layer_weights,
                              prepared_heads, *, tm=None, tn=None):
    B, S = input_ids.shape
    hidden_states = base_model_stub(input_ids, embed_table, layer_weights)

    h_list = [hidden_states[ln].reshape(B * S, HIDDEN) for ln in LAYER_NUMS]
    logits = fused_mlm_heads(h_list, prepared_heads, tm=tm, tn=tn)  # (2, T, V)

    out1 = logits[0].reshape(B, S, VOCAB)
    out2 = logits[1].reshape(B, S, VOCAB)
    return out1, out2


# --------------------------------- main --------------------------------------
if __name__ == "__main__":
    root = jax.random.PRNGKey(0)
    k_ids, k_emb, k_layers, k_h1, k_h2 = jax.random.split(root, 5)

    input_ids = jax.random.randint(k_ids, (BATCH, SEQ), 0, VOCAB, jnp.int32)
    embed_table = jax.random.normal(k_emb, (VOCAB, HIDDEN), jnp.float32) * 0.02
    layer_keys = jax.random.split(k_layers, NUM_LAYERS)
    layer_weights = [
        jax.random.normal(k, (HIDDEN, HIDDEN), jnp.float32) * 0.02
        for k in layer_keys
    ]
    head1_params = init_head_params(k_h1, HIDDEN, VOCAB)
    head2_params = init_head_params(k_h2, HIDDEN, VOCAB)

    # Fold LN gamma/beta into the decoder and pre-stack / pre-cast the head
    # weights ONCE (hoisted out of the per-forward path per the perf review).
    heads = prepare_head_params([head1_params, head2_params])
    jax.block_until_ready(heads)

    # Toy shapes: T = 32 tokens -> two 16-row token tiles; V = 256 -> two
    # lane-dense 128-wide vocab tiles.  This exercises the vocab-major path:
    # decoder slab resident across the token sweep + full-T scratch reuse.
    out1, out2 = more_grad_roberta_forward(
        input_ids, embed_table, layer_weights, heads, tm=16, tn=128)
    jax.block_until_ready((out1, out2))

    assert out1.shape == (BATCH, SEQ, VOCAB) and out2.shape == (BATCH, SEQ, VOCAB)

    # Smoke-check against an f32 pure-JAX reference (kernel uses bf16 operands
    # and folded gamma/beta, so use a loose tolerance).
    hs = base_model_stub(input_ids, embed_table, layer_weights)
    ref1 = mlm_head_ref(hs[LAYER_NUMS[0]].reshape(-1, HIDDEN),
                        head1_params).reshape(BATCH, SEQ, VOCAB)
    ref2 = mlm_head_ref(hs[LAYER_NUMS[1]].reshape(-1, HIDDEN),
                        head2_params).reshape(BATCH, SEQ, VOCAB)
    assert jnp.allclose(out1, ref1, atol=3e-2, rtol=5e-2)
    assert jnp.allclose(out2, ref2, atol=3e-2, rtol=5e-2)

    print("KERNEL_OK")
</pallas_src>

<mosaic_0001>
module attributes {stable_mosaic.version = 11 : i64} {
  func.func @fused_head_kernel(%arg0: i32, %arg1: i32, %arg2: i32, %arg3: memref<1x16x32xbf16, #tpu.memory_space<vmem>>, %arg4: memref<1x32x32xbf16, #tpu.memory_space<vmem>>, %arg5: memref<1x1x32xf32, #tpu.memory_space<vmem>>, %arg6: memref<1x32x128xbf16, #tpu.memory_space<vmem>>, %arg7: memref<1x1x128xf32, #tpu.memory_space<vmem>>, %arg8: memref<1x16x128xf32, #tpu.memory_space<vmem>>, %arg9: memref<2x16x32xbf16, #tpu.memory_space<vmem>>) attributes {dimension_semantics = [#tpu.dimension_semantics<parallel>, #tpu.dimension_semantics<arbitrary>, #tpu.dimension_semantics<arbitrary>], iteration_bounds = array<i64: 2, 2, 2>, scalar_prefetch = 0 : i64, scratch_operands = 1 : i64, tpu.core_type = #tpu.core_type<tc>, window_params = [{transform_indices = @transform_0, window_bounds = array<i64: 1, 16, 32>}, {transform_indices = @transform_1, window_bounds = array<i64: 1, 32, 32>}, {transform_indices = @transform_2, window_bounds = array<i64: 1, 1, 32>}, {transform_indices = @transform_3, window_bounds = array<i64: 1, 32, 128>}, {transform_indices = @transform_4, window_bounds = array<i64: 1, 1, 128>}, {transform_indices = @transform_5, window_bounds = array<i64: 1, 16, 128>}]} {
    %c0_i32 = arith.constant 0 : i32
    %0 = arith.cmpi eq, %arg1, %c0_i32 : i32
    %1 = arith.extui %0 : i1 to i32
    %c0_i32_0 = arith.constant 0 : i32
    %2 = arith.cmpi ne, %1, %c0_i32_0 : i32
    scf.if %2 {
      %c0_11 = arith.constant 0 : index
      %c0_12 = arith.constant 0 : index
      %c0_13 = arith.constant 0 : index
      %16 = vector.load %arg3[%c0_11, %c0_12, %c0_13] : memref<1x16x32xbf16, #tpu.memory_space<vmem>>, vector<1x16x32xbf16>
      %17 = vector.shape_cast %16 : vector<1x16x32xbf16> to vector<16x32xbf16>
      %c0_14 = arith.constant 0 : index
      %c0_15 = arith.constant 0 : index
      %c0_16 = arith.constant 0 : index
      %18 = vector.load %arg4[%c0_14, %c0_15, %c0_16] : memref<1x32x32xbf16, #tpu.memory_space<vmem>>, vector<1x32x32xbf16>
      %19 = vector.shape_cast %18 : vector<1x32x32xbf16> to vector<32x32xbf16>
      %cst_17 = arith.constant dense<0.000000e+00> : vector<16x32xf32>
      %20 = tpu.matmul %17, %19, %cst_17 {dimension_numbers = #tpu.dot_dimension_numbers<[1], [0], [0], [1], [0, 0, 1, 1], [], []>} : vector<16x32xbf16>, vector<32x32xbf16>, vector<16x32xf32> -> vector<16x32xf32>
      %c0_18 = arith.constant 0 : index
      %c0_19 = arith.constant 0 : index
      %c0_20 = arith.constant 0 : index
      %21 = vector.load %arg5[%c0_18, %c0_19, %c0_20] : memref<1x1x32xf32, #tpu.memory_space<vmem>>, vector<1x1x32xf32>
      %22 = vector.shape_cast %21 : vector<1x1x32xf32> to vector<1x32xf32>
      %23 = vector.broadcast %22 : vector<1x32xf32> to vector<16x32xf32>
      %24 = arith.addf %20, %23 : vector<16x32xf32>
      %cst_21 = arith.constant 5.000000e-01 : f32
      %25 = vector.broadcast %cst_21 : f32 to vector<16x32xf32>
      %26 = arith.mulf %25, %24 : vector<16x32xf32>
      %cst_22 = arith.constant 0.707106769 : f32
      %27 = vector.broadcast %cst_22 : f32 to vector<16x32xf32>
      %28 = arith.mulf %24, %27 : vector<16x32xf32>
      %29 = math.erf %28 : vector<16x32xf32>
      %cst_23 = arith.constant 1.000000e+00 : f32
      %30 = vector.broadcast %cst_23 : f32 to vector<16x32xf32>
      %31 = arith.addf %30, %29 : vector<16x32xf32>
      %32 = arith.mulf %26, %31 : vector<16x32xf32>
      %cst_24 = arith.constant dense<0.000000e+00> : vector<16xf32>
      %33 = vector.multi_reduction <add>, %32, %cst_24 [1] : vector<16x32xf32> to vector<16xf32>
      %34 = vector.shape_cast %33 : vector<16xf32> to vector<16x1xf32>
      %cst_25 = arith.constant 3.200000e+01 : f32
      %35 = vector.broadcast %cst_25 : f32 to vector<16x1xf32>
      %36 = arith.divf %34, %35 : vector<16x1xf32>
      %37 = vector.broadcast %36 : vector<16x1xf32> to vector<16x32xf32>
      %38 = arith.subf %32, %37 : vector<16x32xf32>
      %39 = vector.broadcast %36 : vector<16x1xf32> to vector<16x32xf32>
      %40 = arith.subf %32, %39 : vector<16x32xf32>
      %41 = arith.mulf %38, %40 : vector<16x32xf32>
      %cst_26 = arith.constant dense<0.000000e+00> : vector<16xf32>
      %42 = vector.multi_reduction <add>, %41, %cst_26 [1] : vector<16x32xf32> to vector<16xf32>
      %43 = vector.shape_cast %42 : vector<16xf32> to vector<16x1xf32>
      %cst_27 = arith.constant 3.200000e+01 : f32
      %44 = vector.broadcast %cst_27 : f32 to vector<16x1xf32>
      %45 = arith.divf %43, %44 : vector<16x1xf32>
      %46 = vector.broadcast %36 : vector<16x1xf32> to vector<16x32xf32>
      %47 = arith.subf %32, %46 : vector<16x32xf32>
      %cst_28 = arith.constant 9.99999974E-6 : f32
      %48 = vector.broadcast %cst_28 : f32 to vector<16x1xf32>
      %49 = arith.addf %45, %48 : vector<16x1xf32>
      %50 = math.rsqrt %49 : vector<16x1xf32>
      %51 = vector.broadcast %50 : vector<16x1xf32> to vector<16x32xf32>
      %52 = arith.mulf %47, %51 : vector<16x32xf32>
      %53 = arith.truncf %52 : vector<16x32xf32> to vector<16x32xbf16>
      %54 = arith.index_cast %arg2 : i32 to index
      %c0_29 = arith.constant 0 : index
      %c0_30 = arith.constant 0 : index
      %55 = vector.load %arg9[%54, %c0_29, %c0_30] : memref<2x16x32xbf16, #tpu.memory_space<vmem>>, vector<1x16x32xbf16>
      %56 = vector.shape_cast %55 : vector<1x16x32xbf16> to vector<16x32xbf16>
      %57 = vector.shape_cast %53 : vector<16x32xbf16> to vector<1x16x32xbf16>
      tpu.vector_store %arg9[%54, %c0_29, %c0_30], %57 {strides = array<i32>} : memref<2x16x32xbf16, #tpu.memory_space<vmem>>, vector<1x16x32xbf16>,
    } else {
    }
    %3 = arith.index_cast %arg2 : i32 to index
    %c0 = arith.constant 0 : index
    %c0_1 = arith.constant 0 : index
    %4 = vector.load %arg9[%3, %c0, %c0_1] : memref<2x16x32xbf16, #tpu.memory_space<vmem>>, vector<1x16x32xbf16>
    %5 = vector.shape_cast %4 : vector<1x16x32xbf16> to vector<16x32xbf16>
    %c0_2 = arith.constant 0 : index
    %c0_3 = arith.constant 0 : index
    %c0_4 = arith.constant 0 : index
    %6 = vector.load %arg6[%c0_2, %c0_3, %c0_4] : memref<1x32x128xbf16, #tpu.memory_space<vmem>>, vector<1x32x128xbf16>
    %7 = vector.shape_cast %6 : vector<1x32x128xbf16> to vector<32x128xbf16>
    %cst = arith.constant dense<0.000000e+00> : vector<16x128xf32>
    %8 = tpu.matmul %5, %7, %cst {dimension_numbers = #tpu.dot_dimension_numbers<[1], [0], [0], [1], [0, 0, 1, 1], [], []>} : vector<16x32xbf16>, vector<32x128xbf16>, vector<16x128xf32> -> vector<16x128xf32>
    %c0_5 = arith.constant 0 : index
    %c0_6 = arith.constant 0 : index
    %c0_7 = arith.constant 0 : index
    %9 = vector.load %arg7[%c0_5, %c0_6, %c0_7] : memref<1x1x128xf32, #tpu.memory_space<vmem>>, vector<1x1x128xf32>
    %10 = vector.shape_cast %9 : vector<1x1x128xf32> to vector<1x128xf32>
    %11 = vector.broadcast %10 : vector<1x128xf32> to vector<16x128xf32>
    %12 = arith.addf %8, %11 : vector<16x128xf32>
    %c0_8 = arith.constant 0 : index
    %c0_9 = arith.constant 0 : index
    %c0_10 = arith.constant 0 : index
    %13 = vector.load %arg8[%c0_8, %c0_9, %c0_10] : memref<1x16x128xf32, #tpu.memory_space<vmem>>, vector<1x16x128xf32>
    %14 = vector.shape_cast %13 : vector<1x16x128xf32> to vector<16x128xf32>
    %15 = vector.shape_cast %12 : vector<16x128xf32> to vector<1x16x128xf32>
    tpu.vector_store %arg8[%c0_8, %c0_9, %c0_10], %15 {strides = array<i32>} : memref<1x16x128xf32, #tpu.memory_space<vmem>>, vector<1x16x128xf32>,
    return
  }
  func.func @transform_0(%arg0: i32, %arg1: i32, %arg2: i32) -> (i32, i32, i32) {
    %c0_i32 = arith.constant 0 : i32
    %0 = arith.cmpi eq, %arg1, %c0_i32 : i32
    %c0_i32_0 = arith.constant 0 : i32
    %1 = arith.select %0, %arg2, %c0_i32_0 : i32
    %c0_i32_1 = arith.constant 0 : i32
    %c0_i32_2 = arith.constant 0 : i32
    return %arg0, %1, %c0_i32_1 : i32, i32, i32
  }
  func.func @transform_1(%arg0: i32, %arg1: i32, %arg2: i32) -> (i32, i32, i32) {
    %c0_i32 = arith.constant 0 : i32
    %c0_i32_0 = arith.constant 0 : i32
    %c0_i32_1 = arith.constant 0 : i32
    return %arg0, %c0_i32, %c0_i32_0 : i32, i32, i32
  }
  func.func @transform_2(%arg0: i32, %arg1: i32, %arg2: i32) -> (i32, i32, i32) {
    %c0_i32 = arith.constant 0 : i32
    %c0_i32_0 = arith.constant 0 : i32
    %c0_i32_1 = arith.constant 0 : i32
    return %arg0, %c0_i32, %c0_i32_0 : i32, i32, i32
  }
  func.func @transform_3(%arg0: i32, %arg1: i32, %arg2: i32) -> (i32, i32, i32) {
    %c0_i32 = arith.constant 0 : i32
    %c0_i32_0 = arith.constant 0 : i32
    return %arg0, %c0_i32, %arg1 : i32, i32, i32
  }
  func.func @transform_4(%arg0: i32, %arg1: i32, %arg2: i32) -> (i32, i32, i32) {
    %c0_i32 = arith.constant 0 : i32
    %c0_i32_0 = arith.constant 0 : i32
    return %arg0, %c0_i32, %arg1 : i32, i32, i32
  }
  func.func @transform_5(%arg0: i32, %arg1: i32, %arg2: i32) -> (i32, i32, i32) {
    %c0_i32 = arith.constant 0 : i32
    return %arg0, %arg2, %arg1 : i32, i32, i32
  }
}

</mosaic_0001>

<bundles_post_ra>
// kernel: tpu_custom_call.1
= control target key start
LH: loop header
LB: loop body
LE: loop exit
PB: predicated region body
PF: predicated region fallthrough
CT: control target
= control target key end

     0   :  { %s1837_s0 = inlined_call_operand.hbm [shape: bf16[2,32,32], index: 0, kind: input, shape index: {}]   ;;  %s1838_s1 = inlined_call_operand.hbm [shape: bf16[2,32,32], index: 1, kind: input, shape index: {}]   ;;  %s1839_s2 = inlined_call_operand.vmem [shape: f32[2,1,32], index: 2, kind: input, shape index: {}]   ;;  %s1840_s3 = inlined_call_operand.hbm [shape: bf16[2,32,256], index: 3, kind: input, shape index: {}]   ;;  %s1841_s4 = inlined_call_operand.vmem [shape: f32[2,1,256], index: 4, kind: input, shape index: {}]   ;;  %s1842_s5 = inlined_call_operand.hbm [shape: f32[2,32,256], index: 5, kind: output, shape index: {}]  }
   0x1   :  { %1869 = sst [smem:[#allocation31_spill]] %s1837_s0 }
   0x2   :  { %1870 = sst [smem:[#allocation32_spill]] %s1838_s1 }
   0x3   :  { %1871 = sst [smem:[#allocation33_spill]] %s1839_s2 }
   0x4   :  { %1872 = sst [smem:[#allocation34_spill]] %s1841_s4 }
   0x5   :  { %1873 = sst [smem:[#allocation35_spill]] %s1842_s5 }
   0x6   :  { %10 = vsyncpa [#allocation4], 0 }
   0x7   :  { %12 = vsyncpa [#allocation4 + $0x1], 0 }
   0x8   :  { %13 = vsyncpa [#allocation7], 0 }
   0x9   :  { %15 = vsyncpa [#allocation7 + $0x1], 0 }
   0xa   :  { %16 = vsyncpa [#allocation5], 0 }
   0xb   :  { %18 = vsyncpa [#allocation5 + $0x1], 0  ;;  %s1395_s18 = smov 0   ;;  %s1397_s19 = smov 0  }
   0xc   :  { %s1399_s20 = smov 0   ;;  %s1401_s21 = smov 0  }
   0xd   :  { %s1403_s22 = smov 0   ;;  %s1405_s23 = smov 0  }
   0xe   :  { %s1407_s24 = smov 0   ;;  %s1409_s25 = smov 0  }
   0xf   :  { %s1411_s26 = smov 0   ;;  %s1413_s27 = smov 0  }
  0x10   :  { %s1415_s28 = smov 0   ;;  %s1417_s29 = smov 0  }
  0x11   :  { %s1419_s30 = smov 0   ;;  %s1421_s6 = smov 0  }
  0x12   :  { %s1423_s7 = smov 0   ;;  %s1425_s8 = smov 0  }
  0x13   :  { %s1427_s9 = smov 0   ;;  %s1429_s10 = smov 0  }
  0x14   :  { %s1431_s11 = smov 0  }
  0x15 LB: > { %1874 = sst [smem:[#allocation14_spill]] %s1305_s25  ;;  %s1489_s12 = sadd.s32 4294967295, %s1349_s11   ;;  %s1349_s11 = sphi %s1431_s11, %s24_s11   ;;  %s1345_s10 = sphi %s1429_s10, %s1957_s10   ;;  %s1341_s9 = sphi %s1427_s9, %s1956_s9   ;;  %s1337_s8 = sphi %s1425_s8, %s1943_s8   ;;  %s1333_s7 = sphi %s1423_s7, %s1955_s7   ;;  %s1329_s6 = sphi %s1421_s6, %s1954_s6   ;;  %s1325_s30 = sphi %s1419_s30, %s1942_s30   ;;  %s1321_s29 = sphi %s1417_s29, %s1941_s29   ;;  %s1317_s28 = sphi %s1415_s28, %s1940_s28   ;;  %s1313_s27 = sphi %s1413_s27, %s1939_s27   ;;  %s1309_s26 = sphi %s1411_s26, %s1953_s26   ;;  %s1305_s25 = sphi %s1409_s25, %s1952_s25   ;;  %s1301_s24 = sphi %s1407_s24, %s1936_s24   ;;  %s1297_s23 = sphi %s1405_s23, %s1951_s23   ;;  %s1293_s22 = sphi %s1403_s22, %s1950_s22   ;;  %s1289_s21 = sphi %s1401_s21, %s1949_s21   ;;  %s1285_s20 = sphi %s1399_s20, %s1948_s20   ;;  %s1281_s19 = sphi %s1397_s19, %s1946_s19   ;;  %s1277_s18 = sphi %s1395_s18, %s1944_s18  }
  0x16   : > { %1875 = sst [smem:[#allocation15_spill]] %s1309_s26  ;;  %p1866_p0 = scmp.eq.s32.totalorder %s1349_s11, 0 }
  0x17   : > { %1876 = sst [smem:[#allocation16_spill]] %s1317_s28  ;;  %p1865_p1 = scmp.eq.s32.totalorder %s1489_s12, 0 }
  0x18   : > { %1877 = sst [smem:[#allocation17_spill]] %s1321_s29  ;;  %p89_p2 = scmp.ne.s32.totalorder %s1309_s26, %s1305_s25 }
  0x19   : > { %1878 = sst [smem:[#allocation18_spill]] %s1325_s30  ;;  %p95_p3 = scmp.ne.s32.totalorder %s1305_s25, %s1301_s24 }
  0x1a   : > { %1879 = sst [smem:[#allocation19_spill]] %s1329_s6  ;;  %p91_p5 = por %p89_p2, %p1866_p0 }
  0x1b   : > { %1880 = sst [smem:[#allocation20_spill]] %s1333_s7  ;;  %p1502_p6 = por %p95_p3, %p1865_p1 }
  0x1c   : > { %1881 = sst [smem:[#allocation21_spill]] %s1337_s8  ;;  %p1847_p7 = scmp.lt.s32.totalorder %s1349_s11, 8 }
  0x1d   : > { %s1882_s14 = scalar_select %p1502_p6, 1, 0 }
  0x1e   : > { %s256_s15 = sand.u32 1, %s1349_s11   ;;  %s258_s16 = sand.u32 1, %s1309_s26  }
  0x1f   : > { %1883 = sst [smem:[#allocation22_spill]] %s1882_s14  ;;  %s809_s17 = sshll.u32 %s258_s16, 4 }
  0x20   : > { %s845_s5 = sshll.u32 %s1345_s10, 8  ;;  %s1884_s1 = sld [smem:[#allocation32_spill]] }
  0x21   : > { %s260_s2 = scalar_lea.vmem [#allocation6], %s809_s17  ;;  %p1515_p8 = pnand %p1847_p7, %p91_p5 }
  0x22   : > { %s267_s6 = sshll.u32 %s260_s2, 4  ;;  %p815_p9 = scmp.ge.s32.totalorder %s1349_s11, 1  ;;  %s268_s6 = int_to_ptr.vmem [resolvable:$true] %s267_s6 }
  0x23   : > { %p313_p10 = scmp.lt.s32.totalorder %s1349_s11, 9  ;;  %s1521_s7 = scalar_lea.sflag [#allocation7], %s256_s15 }
  0x24   : > { %p1075_p11 = pneg %p1515_p8  ;;  %s1086_s16 = scalar_lea.vmem %s268_s6, 256 }
  0x25   : > { %p1087_p12 = scmp.ne.s32.totalorder %s268_s6, %s1086_s16  ;;  %s1351_s4 = smov [#allocation6]  }
  0x26   : > { %s266_s13 = scalar_lea.hbm %s1884_s1, %s845_s5  ;;  %s1091_s5 = sshll.u32 %s1351_s4, 4  ;;  %s1092_s5 = int_to_ptr.vmem [resolvable:$false] %s1091_s5 }
  0x27   : > { %p1089_p13 = pnand %p1087_p12, %p1075_p11  ;;  %s1093_s2 = scalar_lea.vmem %s1092_s5, 512 }
  0x28   : > { %p1094_p3 = scmp.lt.s32.totalorder %s268_s6, %s1092_s5  ;;  %p1095_p5 = scmp.lt.s32.totalorder %s1093_s2, %s1086_s16 }
  0x29   : > { %p1090_p2 = pneg %p1089_p13 }
  0x2a   : > { %p1096_p7 = por %p1095_p5, %p1094_p3 }
  0x2c   : > { %p1097_p4 = pnand %p1096_p7, %p1090_p2 }
  0x2e   : > { %1100 = shalt.err (!%p1097_p4)
}
  0x2f   : > { %s1848_s30 = smov 64   ;;  %s1850_s15 = smov 4  }
  0x30   : > { %887 = dma.hbm_to_vmem [thread:$0]  (!%p1515_p8), %s266_s13, 256, %s268_s6, %s1521_s7, %s1848_s30, %s1848_s30, %s1850_s15  }
  0x31   : > { %p1535_p4 = pnand %p815_p9, %p313_p10  ;;  %s36_s4 = sadd.s32 1, %s1337_s8 }
  0x32   : > { %s39_s5 = sadd.s32 1, %s1341_s9  ;;  %p37_p7 = scmp.ge.s32.totalorder %s36_s4, 2 }
  0x33   : > { %s1886_s17 = scalar_select %p1535_p4, 1, 0 }
  0x34   : > { %s43_s2 = sadd.s32 1, %s1345_s10  ;;  %p47_p11 = scmp.eq.s32.totalorder %s1341_s9, 0 }
  0x35   : > { %1887 = sst [smem:[#allocation23_spill]] %s1886_s17  ;;  %s56_s24 = sadd.s32 1, %s1321_s29 }
  0x36   : > { %s1959_s4 = smov (%p37_p7, %s36_s4), 0  ;;  %s1961_s5 = smov (!%p37_p7, %s39_s5), %s1341_s9 }
  0x37   : > { %1888 = sst [smem:[#allocation24_spill]] %s1959_s4  ;;  %p41_p8 = scmp.ge.s32.totalorder %s1961_s5, 2 }
  0x38   : > { %s1549_s6 = scalar_select %p47_p11, %s1337_s8, 0 }
  0x39   : > { %p63_p9 = scmp.ne.s32.totalorder %s1321_s29, %s1317_s28  ;;  %p69_p10 = scmp.ne.s32.totalorder %s1317_s28, %s1313_s27 }
  0x3a   : > { %s188_s13 = ssub.s32 %s1337_s8, %s1959_s4  ;;  %s1963_s5 = smov (%p41_p8, %s1961_s5), 0 }
  0x3b   : > { %1889 = sst [smem:[#allocation25_spill]] %s1963_s5  ;;  %s1965_s2 = smov (!%p41_p8, %s43_s2), %s1345_s10 }
  0x3c   : > { %p49_p12 = scmp.eq.s32.totalorder %s1963_s5, 0  ;;  %p1563_p13 = por %p1866_p0, %p63_p9 }
  0x3d   : > { %p45_p2 = scmp.ge.s32.totalorder %s1965_s2, 2  ;;  %p1569_p3 = por %p1865_p1, %p69_p10 }
  0x3e   : > { %s50_s27 = scalar_select %p49_p12, %s1959_s4, 0 }
  0x3f   : > { %s1891_s15 = scalar_select %p1569_p3, 1, 0 }
  0x40   : > { %s1967_s2 = smov (%p45_p2, %s1965_s2), 0  ;;  %s52_s16 = ssub.s32 %s1549_s6, %s50_s27 }
  0x41   : > { %1892 = sst [smem:[#allocation26_spill]] %s1891_s15  ;;  %s132_s1 = ssub.s32 %s1341_s9, %s1963_s5 }
  0x42   : > { %1893 = sst [smem:[#allocation27_spill]] %s1967_s2  ;;  %s51_s8 = ssub.s32 %s1345_s10, %s1967_s2 }
  0x43   : > { %s194_s14 = sadd.s32 1, %s1285_s20  ;;  %s53_s25 = sor.u32 %s52_s16, %s51_s8 }
  0x44   : > { %p80_p5 = scmp.eq.s32.totalorder %s51_s8, 0  ;;  %p54_p7 = scmp.eq.s32.totalorder %s53_s25, 0 }
  0x45   : > { %s133_s15 = sor.u32 %s132_s1, %s51_s8  ;;  %s1894_s28 = sadd.s32 1, %s1309_s26 }
  0x46   : > { %s1585_s4 = scalar_select %p80_p5, %s1309_s26, %s1894_s28  }
  0x47   : > { %s1588_s17 = scalar_select %p54_p7, %s1321_s29, %s56_s24  }
  0x48   : > { %1895 = sst [smem:[#allocation28_spill]] %s1585_s4  ;;  %p1590_p11 = scmp.eq.s32.totalorder %s133_s15, 0 }
  0x49   : > { %1896 = sst [smem:[#allocation29_spill]] %s1588_s17  ;;  %s189_s5 = sor.u32 %s188_s13, %s51_s8 }
  0x4a   : > { %s191_s2 = sor.u32 %s189_s5, %s132_s1  ;;  %p204_p8 = scmp.ne.s32.totalorder %s1285_s20, %s1281_s19 }
  0x4b   : > { %p192_p9 = scmp.eq.s32.totalorder %s191_s2, 0  ;;  %p210_p10 = scmp.ne.s32.totalorder %s1281_s19, %s1277_s18 }
  0x4c   : > { %p1898_p12 = scmp.eq.s32.totalorder %s1489_s12, 7  ;;  %s1900_s28 = sadd.s32 4294967294, %s1349_s11  }
  0x4d   : > { %p211_p5 = scmp.eq.s32.totalorder %s1900_s28, 7  ;;  %s231_s8 = sand.u32 1, %s1321_s29  }
  0x4e   : > { %p1600_p2 = por %p1898_p12, %p204_p8  ;;  %s805_s1 = sshll.u32 %s231_s8, 3 }
  0x4f   : > { %s1607_s16 = scalar_select %p192_p9, %s1285_s20, %s194_s14  }
  0x50   : > { %s1899_s25 = scalar_select %p1600_p2, 1, 0 }
  0x51   : > { %1901 = sst [smem:[#allocation30_spill]] %s1607_s16  ;;  %p1609_p7 = por %p211_p5, %p210_p10 }
  0x52   : > { %s806_s5 = sshll.u32 %s1549_s6, 1  ;;  %s807_s24 = sshll.u32 %s1345_s10, 2 }
  0x53   : > { %s1902_s15 = scalar_select %p1609_p7, 1, 0 }
  0x54   : > { %s235_s13 = scalar_lea.vmem [#allocation3], %s805_s1  ;;  %s243_s17 = sadd.s32 %s807_s24, %s806_s5 }
  0x55   : > { %s246_s2 = sshll.u32 %s235_s13, 4  ;;  %s808_s4 = sshll.u32 %s243_s17, 6  ;;  %s247_s2 = int_to_ptr.vmem [resolvable:$true] %s246_s2 }
  0x56   : > { %p1903_p8 = scmp.lt.s32.totalorder %s1349_s11, 8  ;;  %s1905_s0 = sld [smem:[#allocation31_spill]] }
  0x57   : > { %s232_s29 = scalar_lea.sflag [#allocation4], %s231_s8  ;;  %s1114_s6 = scalar_lea.vmem %s247_s2, 128 }
  0x58   : > { %p1620_p12 = pnand %p1903_p8, %p1563_p13  ;;  %p1115_p10 = scmp.ne.s32.totalorder %s247_s2, %s1114_s6 }
  0x59   : > { %s1354_s1 = smov [#allocation3]  }
  0x5a   : > { %p1103_p9 = pneg %p1620_p12  ;;  %s1119_s17 = sshll.u32 %s1354_s1, 4  ;;  %s1120_s17 = int_to_ptr.vmem [resolvable:$false] %s1119_s17 }
  0x5b   : > { %s1121_s30 = scalar_lea.vmem %s1120_s17, 256  ;;  %p1122_p13 = scmp.lt.s32.totalorder %s247_s2, %s1120_s17 }
  0x5c   : > { %s245_s16 = scalar_lea.hbm %s1905_s0, %s808_s4  ;;  %p1117_p5 = pnand %p1115_p10, %p1103_p9 }
  0x5d   : > { %p1123_p8 = scmp.lt.s32.totalorder %s1121_s30, %s1114_s6 }
  0x5e   : > { %p1118_p1 = pneg %p1117_p5 }
  0x5f   : > { %p1124_p0 = por %p1123_p8, %p1122_p13 }
  0x61   : > { %p1125_p7 = pnand %p1124_p0, %p1118_p1 }
  0x63   : > { %1128 = shalt.err (!%p1125_p7)
}
  0x64   : > { %s1906_s5 = smov 4   ;;  %s1907_s4 = smov 64  }
  0x65   : > { %884 = dma.hbm_to_vmem [thread:$0]  (!%p1620_p12), %s245_s16, 128, %s247_s2, %s232_s29, %s1907_s4, %s1907_s4, %s1906_s5  }
  0x66   : > { %s136_s8 = sadd.s32 1, %s1297_s23  ;;  %p143_p0 = scmp.ne.s32.totalorder %s1297_s23, %s1293_s22 }
  0x67   : > { %s1640_s26 = scalar_select %p1590_p11, %s1297_s23, %s136_s8  }
  0x68   : > { %p1908_p1 = scmp.eq.s32.totalorder %s1349_s11, 0  ;;  %p149_p9 = scmp.ne.s32.totalorder %s1293_s22, %s1289_s21 }
  0x69   : > { %s285_s24 = sand.u32 1, %s1297_s23   ;;  %s813_s13 = sshll.u32 %s1345_s10, 3 }
  0x6a   : > { %p145_p7 = por %p143_p0, %p1908_p1  ;;  %p1909_p10 = scmp.eq.s32.totalorder %s1489_s12, 0 }
  0x6b   : > { %s812_s28 = sshll.u32 %s285_s24, 4  ;;  %s292_s6 = sadd.s32 %s1341_s9, %s813_s13 }
  0x6c   : > { %p1650_p5 = por %p149_p9, %p1909_p10  ;;  %s814_s1 = sshll.u32 %s292_s6, 6 }
  0x6d   : > { %s287_s29 = scalar_lea.vmem [#allocation8], %s812_s28  ;;  %s294_s27 = scalar_lea.hbm %s1840_s3, %s814_s1 }
  0x6e   : > { %s1910_s14 = scalar_select %p1650_p5, 1, 0 }
  0x6f   : > { %s295_s16 = sshll.u32 %s287_s29, 4  ;;  %p1911_p11 = scmp.lt.s32.totalorder %s1349_s11, 8  ;;  %s296_s16 = int_to_ptr.vmem [resolvable:$true] %s295_s16 }
  0x70   : > { %s1142_s30 = scalar_lea.vmem %s296_s16, 256  ;;  %s1355_s8 = smov [#allocation8]  }
  0x71   : > { %p1660_p12 = pnand %p1911_p11, %p145_p7  ;;  %p1143_p8 = scmp.ne.s32.totalorder %s296_s16, %s1142_s30 }
  0x72   : > { %s1147_s24 = sshll.u32 %s1355_s8, 4  ;;  %s1148_s24 = int_to_ptr.vmem [resolvable:$false] %s1147_s24 }
  0x73   : > { %p1131_p13 = pneg %p1660_p12  ;;  %s1149_s13 = scalar_lea.vmem %s1148_s24, 512 }
  0x74   : > { %p1150_p9 = scmp.lt.s32.totalorder %s296_s16, %s1148_s24  ;;  %p1151_p10 = scmp.lt.s32.totalorder %s1149_s13, %s1142_s30 }
  0x75   : > { %p1145_p0 = pnand %p1143_p8, %p1131_p13 }
  0x76   : > { %p1152_p2 = por %p1151_p10, %p1150_p9 }
  0x77   : > { %p1146_p1 = pneg %p1145_p0 }
  0x79   : > { %p1153_p5 = pnand %p1152_p2, %p1146_p1 }
  0x7b   : > { %1156 = shalt.err (!%p1153_p5)
}
  0x7c   : > { %s1356_s28 = smov 128   ;;  %317 = sbr.rel (%p1535_p4) target bundleno = 922 (0x39a), region = 40 }
  0x7d   : > { %890 = dma.hbm_to_vmem [thread:$0]  (!%p1660_p12), %s294_s27, 256, %s296_s16, %s1521_s7, %s1356_s28, %s1907_s4, %s1906_s5  }
  0x7e   : > { %s1914_s1 = sld [smem:[#allocation16_spill]] (!%p1535_p4) }
  0x84   : > { %s319_s2 = sand.u32 1, %s1914_s1  }
  0x85   : > { %s1674_s17 = sshll.u32 %s319_s2, 3  ;;  %s320_s30 = scalar_lea.sflag [#allocation4], %s319_s2 }
  0x86   : > { %1260 = dma.done.wait (%p1569_p3), %s320_s30, 128  }
  0x87   : > { %1262 = vsyncadd (%p1569_p3), %s320_s30, 4294967168  ;;  %s1916_s21 = sld [smem:[#allocation14_spill]]  ;;  %s328_s7 = sand.u32 1, %s1489_s12  }
  0x88   : > { %s329_s16 = scalar_lea.sflag [#allocation7], %s328_s7 }
  0x8d   : > { %s330_s5 = sand.u32 1, %s1916_s21  }
  0x8e   : > { %s817_s4 = sshll.u32 %s330_s5, 4 }
  0x8f   : > { %s332_s27 = scalar_lea.vmem [#allocation6], %s817_s4 }
  0x90   : > { %1264 = dma.done.wait (%p1502_p6), %s329_s16, 256  }
  0x91   : > { %1266 = vsyncadd (%p1502_p6), %s329_s16, 4294967040  ;;  %s339_s13 = sand.u32 1, %s1293_s22   ;;  %p1918_p4 = scmp.ne.s32.totalorder %s1910_s14, 0 }
  0x92   : > { %s1688_s28 = sshll.u32 %s339_s13, 4 }
  0x93   : > { %1268 = dma.done.wait (%p1918_p4), %s329_s16, 256  }
  0x94   : > { %1270 = vsyncadd (%p1918_p4), %s329_s16, 4294967040  ;;  %s1919_s12 = sld [smem:[#allocation20_spill]]  ;;  %s385_s29 = sand.u32 1, %s1281_s19  }
  0x95   : > { %s1920_s1 = sld [smem:[#allocation19_spill]]  ;;  %s819_s2 = sshll.u32 %s385_s29, 4 }
  0x96   : > { %s1921_s7 = sld [smem:[#allocation33_spill]]  ;;  %s1711_s0 = scalar_lea.vmem [#allocation9], %s819_s2 }
  0x97   : > { %s1922_s6 = sld [smem:[#allocation34_spill]] }
  0x9a   : > { %p391_p6 = scmp.lt.s32.totalorder %s1919_s12, 1 }
  0x9b   : > { %p396_p3 = scmp.lt.s32.totalorder %s1920_s1, 1  ;;  %p821_p2 = scmp.ne.s32.totalorder %s1920_s1, 0 }
  0x9c   : > { %s1969_s12 = smov (!%p391_p6, %s1919_s12), 1 }
  0x9d   : > { %s397_s30 = scalar_select %p396_p3, %s1920_s1, 1 }
  0x9e   : > { %s393_s5 = scalar_lea.vmem %s1921_s7, %s1969_s12  ;;  %s820_s4 = sshll.u32 %s1969_s12, 1 }
  0x9f   : > { %s1705_s14 = sadd.s32 %s820_s4, %s397_s30  ;;  %406 = sbr.rel (%p821_p2) target bundleno = 699 (0x2bb), region = 56 }
  0xa0   : > { %s400_s8 = scalar_lea.vmem %s1922_s6, %s1705_s14  ;;  %s1923_s12 = scalar_lea.vmem (!%p821_p2), [#allocation3], %s1674_s17 }
  0xa1   : > { %s1924_s17 = sld [smem:[#allocation18_spill]] (!%p821_p2) }
  0xa4   : > { %v1059_v0 = vld [vmem:[%s332_s27 + $0x8] sm:$0xff]   ;;  %v1357_v1 = vmov 0.0   ;;  %v1060_v2 = vld [vmem:[%s332_s27] sm:$0xff]   ;;  %vm1358_vm0 = vmmov 0   ;;  %vm437_vm1 = vcmask 261120   ;;  %vm530_vm2 = vcmask 257024  }
  0xa5   : > { %857 = vmatprep.subr.bf16.mxu0 %v1357_v1  ;;  %861 = vmatprep.mubr.msk.bf16.mxu0 %vm1358_vm0, %v1357_v1  ;;  %v1061_v3 = vld [vmem:[%s1923_s12] sm:$0xff]   ;;  %v822_v4 = vld [vmem:[%s393_s5] ss:$0 sm:$0xff] }
  0xa6   : > { %858 = vmatpush3.bf16.msra.mxu0 %v1059_v0 }
  0xa7   : > { %859 = vmatprep.subr.bf16.mxu0 %v1357_v1  ;;  %s848_s27 = sshll.u32 %s1924_s17, 3 }
  0xa8   : > { %s529_s6 = scalar_lea.vmem [#allocation2], %s848_s27 }
  0xaa   : > { %860 = vmatpush3.bf16.msra.mxu0 %v1060_v2 }
  0xad   : > { %862 = vmatmul.mubr.msk.bf16.vlgmr.msra.gmra.mxu0 %vm437_vm1, %v1061_v3 }
 0x16d   : > { %v475_v5 = vpop.f32.mrf.mxu0 }
 0x16e   : > { %v476_v6 = vadd.f32 %v822_v4, %v475_v5 }
 0x16f   : > { %v863_v7 = vpop.f32.mrf.mxu0 }
 0x170   : > { %v484_v8 = vmul.f32 0.70710677, %v476_v6  ;;  %v482_v14 = vmul.f32 0.5, %v476_v6 }
 0x171   : > { %v478_v9 = vpop.f32.mrf.mxu0 }
 0x172   : > { %1062 = verf.f32 %v484_v8  ;;  %v479_v10 = vadd.f32 %v822_v4, %v478_v9 }
 0x173   : > { %v864_v11 = vpop.f32.mrf.mxu0 }
 0x174   : > { %v485_v12 = vmul.f32 0.70710677, %v479_v10  ;;  %v483_v18 = vmul.f32 0.5, %v479_v10 }
 0x176   : > { %1064 = verf.f32 %v485_v12 }
 0x17f   : > { %v1063_v13 = vpop.eup %1062 }
 0x180   : > { %v488_v15 = vadd.f32 1.0, %v1063_v13 }
 0x182   : > { %v490_v16 = vmul.f32 %v488_v15, %v482_v14 }
 0x183   : > { %v1065_v17 = vpop.eup %1064 }
 0x184   : > { %v492_v19 = vsel %vm437_vm1, %v490_v16, 0.0  ;;  %v489_v20 = vadd.f32 1.0, %v1065_v17 }
 0x185   : > { %493 = vadd.xlane.f32.xlu0 %v492_v19 }
 0x186   : > { %v491_v21 = vmul.f32 %v489_v20, %v483_v18 }
 0x188   : > { %v495_v22 = vsel %vm437_vm1, %v491_v21, 0.0 }
 0x189   : > { %496 = vadd.xlane.f32.xlu0 %v495_v22 }
 0x20e   : > { %v494_v23 = vpop.xlane.xlu0 %493 }
 0x20f   : > { %v499_v24 = vmul.f32 0.03125, %v494_v23 }
 0x211   : > { %v501_v25 = vsub.f32 %v490_v16, %v499_v24 }
 0x212   : > { %v497_v26 = vpop.xlane.xlu0 %496 }
 0x213   : > { %v500_v27 = vmul.f32 0.03125, %v497_v26  ;;  %v503_v28 = vmul.f32 %v501_v25, %v501_v25 }
 0x215   : > { %v502_v29 = vsub.f32 %v491_v21, %v500_v27  ;;  %v505_v30 = vsel %vm437_vm1, %v503_v28, 0.0 }
 0x216   : > { %506 = vadd.xlane.f32.xlu1 %v505_v30 }
 0x217   : > { %v504_v31 = vmul.f32 %v502_v29, %v502_v29 }
 0x219   : > { %v508_v32 = vsel %vm437_vm1, %v504_v31, 0.0 }
 0x21a   : > { %509 = vadd.xlane.f32.xlu1 %v508_v32 }
 0x29f   : > { %v507_v33 = vpop.xlane.xlu1 %506 }
 0x2a0   : > { %v511_v34 = vmul.f32 0.03125, %v507_v33 }
 0x2a2   : > { %v513_v35 = vadd.f32 1e-05, %v511_v34 }
 0x2a3   : > { %v510_v36 = vpop.xlane.xlu1 %509 }
 0x2a4   : > { %1066 = vrsqrt.f32 %v513_v35  ;;  %v512_v37 = vmul.f32 0.03125, %v510_v36 }
 0x2a6   : > { %v514_v38 = vadd.f32 1e-05, %v512_v37 }
 0x2a8   : > { %1068 = vrsqrt.f32 %v514_v38 }
 0x2b1   : > { %v1067_v39 = vpop.eup %1066 }
 0x2b2   : > { %v517_v40 = vmul.f32 %v1067_v39, %v501_v25 }
 0x2b4   : > { %v846_v41 = vpack.c.bf16 %v517_v40, %v517_v40 }
 0x2b5   : > { %v1069_v42 = vpop.eup %1068 }
 0x2b6   : > { %531 = vst.msk [vmem:[%s529_s6] sm:$0xf] %vm530_vm2, %v846_v41  ;;  %v518_v43 = vmul.f32 %v1069_v42, %v502_v29 }
 0x2b8   : > { %v847_v44 = vpack.c.bf16 %v518_v43, %v518_v43 }
 0x2ba   : > { %532 = vst.msk [vmem:[%s529_s6 + $0x4] sm:$0xf] %vm530_vm2, %v847_v44 }
 0x2bb PF: > { %s1925_s1 = scalar_lea.vmem [#allocation8], %s1688_s28  ;;  %s1926_s2 = sld [smem:[#allocation18_spill]]  ;;  %v1359_v46 = vmov 0.0   ;;  %vm1360_vm3 = vmmov 0   ;;  %vm566_vm4 = vcmask 261120  }
 0x2bc   : > { %s1927_s30 = sld [smem:[#allocation19_spill]]  ;;  %v1070_v45 = vld [vmem:[%s1925_s1 + $0x8] sm:$0xff]   ;;  %865 = vmatprep.subr.bf16.mxu0 %v1359_v46  ;;  %s1929_s24 = smov %s1925_s1  ;;  %869 = vmatprep.mubr.msk.bf16.mxu0 %vm1360_vm3, %v1359_v46  ;;  %v833_v49 = vld [vmem:[%s400_s8] ss:$0 sm:$0xff] }
 0x2bd   : > { %s1928_s21 = sld [smem:[#allocation20_spill]]  ;;  %866 = vmatpush3.bf16.msra.mxu0 %v1070_v45  ;;  %v1071_v47 = vld [vmem:[%s1929_s24] sm:$0xff]   ;;  %s631_s1 = sshll.u32 %s1711_s0, 4  ;;  %s1742_s1 = int_to_ptr.vmem [resolvable:$true] %s631_s1 }
 0x2be   : > { %867 = vmatprep.subr.bf16.mxu0 %v1359_v46  ;;  %s1747_s8 = scalar_lea.sflag [#allocation5], %s385_s29  ;;  %s1157_s14 = scalar_lea.vmem %s1742_s1, 256 }
 0x2bf   : > { %p1158_p7 = scmp.ne.s32.totalorder %s1742_s1, %s1157_s14  ;;  %p1932_p5 = scmp.ne.s32.totalorder %s1899_s25, 0 }
 0x2c1   : > { %s849_s7 = sshll.u32 %s1926_s2, 3  ;;  %868 = vmatpush3.bf16.msra.mxu0 %v1071_v47  ;;  %s850_s4 = sshll.u32 %s1926_s2, 2 }
 0x2c2   : > { %s535_s5 = scalar_lea.vmem [#allocation2], %s849_s7  ;;  %s626_s16 = sadd.s32 %s1927_s30, %s850_s4 }
 0x2c3   : > { %v1072_v48 = vld [vmem:[%s535_s5] sm:$0xff]   ;;  %s841_s13 = sshll.u32 %s1928_s21, 3  ;;  %s1931_s2 = sld [smem:[#allocation35_spill]] }
 0x2c4   : > { %870 = vmatmul.mubr.msk.bf16.vlgmr.msra.gmra.mxu0 %vm566_vm4, %v1072_v48  ;;  %s628_s12 = sadd.s32 %s841_s13, %s626_s16  ;;  %p1159_p11 = pnand %p1158_p7, %p1932_p5 }
 0x2c5   : > { %s842_s6 = sshll.u32 %s628_s12, 7  ;;  %s1361_s30 = smov [#allocation9]  }
 0x2c6   : > { %p1160_p12 = pneg %p1159_p11  ;;  %s1161_s21 = sshll.u32 %s1361_s30, 4  ;;  %s1162_s21 = int_to_ptr.vmem [resolvable:$false] %s1161_s21 }
 0x2c7   : > { %s1163_s4 = scalar_lea.vmem %s1162_s21, 512  ;;  %p1164_p13 = scmp.lt.s32.totalorder %s1742_s1, %s1162_s21 }
 0x2c8   : > { %p1165_p8 = scmp.lt.s32.totalorder %s1163_s4, %s1157_s14 }
 0x2c9   : > { %s1740_s5 = scalar_lea.hbm %s1931_s2, %s842_s6 }
 0x2ca   : > { %p1166_p0 = por %p1165_p8, %p1164_p13 }
 0x2cc   : > { %p1167_p1 = pnand %p1166_p0, %p1160_p12 }
 0x384   : > { %v604_v50 = vpop.f32.mrf.mxu0 }
 0x385   : > { %v605_v51 = vadd.f32 %v833_v49, %v604_v50 }
 0x386   : > { %v871_v52 = vpop.f32.mrf.mxu0 }
 0x387   : > { %611 = vst [vmem:[%s1711_s0] sm:$0xff] %v605_v51 }
 0x388   : > { %v607_v53 = vpop.f32.mrf.mxu0 }
 0x389   : > { %v608_v54 = vadd.f32 %v833_v49, %v607_v53 }
 0x38a   : > { %v872_v55 = vpop.f32.mrf.mxu0 }
 0x38b   : > { %612 = vst [vmem:[%s1711_s0 + $0x8] sm:$0xff] %v608_v54 }
 0x38c   : > { %1170 = shalt.err (!%p1167_p1)
}
 0x38d   : > { %s1171_s0 = scalar_lea.hbm %s1740_s5, 256  ;;  %s1175_s13 = scalar_lea.hbm %s1931_s2, 2048 }
 0x38e   : > { %p1172_p9 = scmp.ne.s32.totalorder %s1740_s5, %s1171_s0  ;;  %p1176_p6 = scmp.lt.s32.totalorder %s1740_s5, %s1931_s2 }
 0x38f   : > { %p1177_p3 = scmp.lt.s32.totalorder %s1175_s13, %s1171_s0 }
 0x390   : > { %p1173_p10 = pnand %p1172_p9, %p1932_p5 }
 0x391   : > { %p1178_p2 = por %p1177_p3, %p1176_p6 }
 0x392   : > { %p1174_p4 = pneg %p1173_p10 }
 0x394   : > { %p1179_p7 = pnand %p1178_p2, %p1174_p4 }
 0x396   : > { %1182 = shalt.err (!%p1179_p7)
}
 0x397   : > { %s1362_s28 = smov 128   ;;  %s1363_s27 = smov 256  }
 0x398   : > { %s1364_s6 = smov 8  }
 0x399   : > { %879 = dma.vmem_to_hbm [thread:$0]  (%p1932_p5), %s1742_s1, 256, %s1740_s5, %s1747_s8, %s1362_s28, %s1363_s27, %s1364_s6  }
 0x39a PF: > { %p896_p11 = scmp.ge.s32.totalorder %s1349_s11, 2  ;;  %s646_s24 = sand.u32 1, %s1277_s18  }
 0x39b   : > { %p1933_p12 = scmp.ne.s32.totalorder %s1902_s15, 0  ;;  %s647_s7 = scalar_lea.sflag [#allocation5], %s646_s24 }
 0x39d   : > { %p892_p13 = pnand %p896_p11, %p1933_p12 }
 0x39f   : > { %p893_p8 = pneg %p892_p13 }
 0x3a1   : > { %1272 = dma.done.wait (%p893_p8), %s647_s7, 256  }
 0x3a2   : > { %1274 = vsyncadd (%p893_p8), %s647_s7, 4294967040  ;;  %s24_s11 = sadd.s32 1, %s1349_s11   ;;  %s1935_s25 = sld [smem:[#allocation30_spill]] }
 0x3a3   : > { %p1775_p0 = scmp.ge.s32.totalorder %s24_s11, 10   ;;  %s1936_s24 = sld [smem:[#allocation14_spill]] }
 0x3a4   : > { %s1937_s1 = sld [smem:[#allocation15_spill]]  ;;  %s1944_s18 = smov %s1281_s19 }
 0x3a5   : > { %s1938_s15 = sld [smem:[#allocation28_spill]]  ;;  %s1946_s19 = smov %s1285_s20 }
 0x3a6   : > { %s1939_s27 = sld [smem:[#allocation16_spill]]  ;;  %s1949_s21 = smov %s1293_s22 }
 0x3a7   : > { %s1940_s28 = sld [smem:[#allocation17_spill]]  ;;  %s1950_s22 = smov %s1297_s23 }
 0x3a8   : > { %s1941_s29 = sld [smem:[#allocation29_spill]]  ;;  %s1948_s20 = smov %s1935_s25 }
 0x3a9   : > { %s1942_s30 = sld [smem:[#allocation21_spill]]  ;;  %s1951_s23 = smov %s1640_s26 }
 0x3aa   : > { %s1943_s8 = sld [smem:[#allocation24_spill]]  ;;  %s1952_s25 = smov %s1937_s1 }
 0x3ab   : > { %s1945_s5 = sld [smem:[#allocation25_spill]]  ;;  %s1953_s26 = smov %s1938_s15 }
 0x3ac   : > { %s1947_s4 = sld [smem:[#allocation27_spill]]  ;;  %s1954_s6 = smov %s1341_s9 }
 0x3ad   : > { %s1955_s7 = smov %s1345_s10 }
 0x3ae   :  { %23 = sbr.rel (!%p1775_p0) target bundleno = 21 (0x15), region = 121 }
 0x3b1   : > { %s1956_s9 = smov %s1945_s5 }
 0x3b2   : > { %s1957_s10 = smov %s1947_s4 }
 0x3b3   :  { %652 = vsyncpa [#allocation4], 1 }
 0x3b4   :  { %654 = vsyncpa [#allocation4 + $0x1], 1 }
 0x3b5   :  { %655 = vsyncpa [#allocation7], 1 }
 0x3b6   :  { %657 = vsyncpa [#allocation7 + $0x1], 1 }
 0x3b7   :  { %658 = vsyncpa [#allocation5], 1 }
 0x3b8   :  { %660 = vsyncpa [#allocation5 + $0x1], 1 }

</bundles_post_ra>
